<compile_context>
chip_gen: v7x
topology: tpu7x:2x2x1
jax: 0.10.0
libtpu: 0.0.40
codegen_flags: <defaults>
</compile_context>

<pallas_src>
import functools

import jax
import jax.numpy as jnp
from jax import lax
from jax.experimental import pallas as pl
from jax.experimental.pallas import tpu as pltpu


def _resblock_kernel(H, W, x_ref, w1_ref, b1_ref, w2_ref, b2_ref, w3_ref,
                     b3_ref, out_ref, line_ref, slab_ref):
    # Per grid step (one group of G batch images stacked along sublanes):
    #   x_ref    : (R, HW)          R = G*C, lanes = H*W
    #   w1_ref   : (R, 9*R)         conv1 block-diagonal im2col weight
    #   w2_ref   : (R, 9*R)         conv2
    #   w3_ref   : (R, R)           conv3 1x1 block-diagonal
    #   b*_ref   : (R, 1)           per-(image, channel) bias (tiled bias)
    #   out_ref  : (R, HW)
    #   line_ref : (R, HW + 2*PAD)  zero-bordered line buffer
    #   slab_ref : (9*R, HW)        im2col slab, rows [t*R:(t+1)*R] = tap t
    R = x_ref.shape[0]
    HW = H * W
    PAD = (line_ref.shape[1] - HW) // 2   # 128-aligned interior offset, >= W+1

    # Column index of every flattened pixel (lane axis).  Only column wrap of
    # the flat layout needs masking; rows out of range land in the zero border.
    col = lax.broadcasted_iota(jnp.int32, (1, HW), 1) % W
    mask_l = col >= 1          # tap (dx = -1) is valid
    mask_r = col <= W - 2      # tap (dx = +1) is valid

    # Zero only the two border strips (a few vregs), every step, so the kernel
    # stays correct if the "parallel" axis is split across TensorCores.
    line_ref[:, :PAD] = jnp.zeros((R, PAD), jnp.float32)
    line_ref[:, PAD + HW:] = jnp.zeros((R, PAD), jnp.float32)

    def build_slab():
        # im2col: each tap is one lane-rotated slice of the line buffer,
        # masked for column wrap, stored once as a full sublane-aligned block.
        for ky in range(3):
            for kx in range(3):
                t = ky * 3 + kx
                s = (ky - 1) * W + (kx - 1)
                tap = line_ref[:, PAD + s:PAD + s + HW]      # (R, HW)
                if kx == 0:
                    tap = jnp.where(mask_l, tap, 0.0)
                elif kx == 2:
                    tap = jnp.where(mask_r, tap, 0.0)
                slab_ref[t * R:(t + 1) * R, :] = tap

    x = x_ref[...]                                   # (R, HW)

    # conv1 (3x3, pad=1) + ReLU : one K=9R matmul on the MXU, f32 accumulate.
    line_ref[:, PAD:PAD + HW] = x                    # dense, 128-aligned store
    build_slab()
    y1 = jnp.maximum(
        jnp.dot(w1_ref[...], slab_ref[...],
                preferred_element_type=jnp.float32) + b1_ref[...],
        0.0)

    # conv2 (3x3, pad=1) on y1 -- reuse line buffer (interior fully rewritten,
    # borders still zero) and slab (fully rewritten).
    line_ref[:, PAD:PAD + HW] = y1
    build_slab()
    y12 = jnp.dot(w2_ref[...], slab_ref[...],
                  preferred_element_type=jnp.float32) + b2_ref[...]

    # conv3 (1x1) residual branch on the original input, then final ReLU.
    y2 = jnp.dot(w3_ref[...], x, preferred_element_type=jnp.float32) + b3_ref[...]
    out_ref[...] = jnp.maximum(y12 + y2, 0.0).astype(out_ref.dtype)


def _pick_group(N, C):
    # Largest divisor of N whose stacked channel count fills the 8 f32 sublanes.
    for g in range(N, 0, -1):
        if N % g == 0 and (g * C) % 8 == 0:
            return g
    return N   # fall back to one step; sublanes may be partially filled


def _blockdiag_conv3x3(w_oihw, G):
    # (C_out, C_in, 3, 3) OIHW -> (G*C, 9*G*C) block-diagonal over the batch
    # group, columns ordered (tap t = ky*3+kx, image g, c_in) to match the slab.
    C = w_oihw.shape[0]
    w_t = jnp.transpose(w_oihw, (2, 3, 0, 1)).reshape(9, C, C)   # [t, c_out, c_in]
    eye = jnp.eye(G, dtype=w_t.dtype)
    big = jnp.einsum('tab,gh->gathb', w_t, eye)                  # (G,C,9,G,C)
    return big.reshape(G * C, 9 * G * C)


def _blockdiag_1x1(w, G):
    C = w.shape[0]
    eye = jnp.eye(G, dtype=w.dtype)
    return jnp.einsum('ab,gh->gahb', w, eye).reshape(G * C, G * C)


@jax.jit
def residual_block3(x_nchw, w1, b1, w2, b2, w3, b3):
    """x_nchw: (N, C, H, W) f32.  w1, w2: (C, C, 3, 3) OIHW; w3: (C, C); b*: (C,)."""
    N, C, H, W = x_nchw.shape
    HW = H * W
    G = _pick_group(N, C)                 # batch images packed per grid step
    n_groups = N // G
    R = G * C
    PAD = ((W + 1 + 127) // 128) * 128    # >= W+1 and 128-aligned interior offset

    x_flat = x_nchw.reshape(N * C, HW).astype(jnp.float32)   # free reshape

    # TODO(synk): for production channel counts, cast these MXU operands (and
    # the in-kernel slab) to bfloat16 while keeping f32 accumulation.
    w1bd = _blockdiag_conv3x3(w1.astype(jnp.float32), G)
    w2bd = _blockdiag_conv3x3(w2.astype(jnp.float32), G)
    w3bd = _blockdiag_1x1(w3.astype(jnp.float32), G)
    b1w = jnp.tile(b1.astype(jnp.float32), G).reshape(R, 1)
    b2w = jnp.tile(b2.astype(jnp.float32), G).reshape(R, 1)
    b3w = jnp.tile(b3.astype(jnp.float32), G).reshape(R, 1)

    out_flat = pl.pallas_call(
        functools.partial(_resblock_kernel, H, W),
        out_shape=jax.ShapeDtypeStruct((N * C, HW), jnp.float32),
        grid_spec=pltpu.PrefetchScalarGridSpec(
            num_scalar_prefetch=0,
            grid=(n_groups,),
            in_specs=[
                pl.BlockSpec((R, HW), lambda i: (i, 0)),
                pl.BlockSpec((R, 9 * R), lambda i: (0, 0)),
                pl.BlockSpec((R, 1), lambda i: (0, 0)),
                pl.BlockSpec((R, 9 * R), lambda i: (0, 0)),
                pl.BlockSpec((R, 1), lambda i: (0, 0)),
                pl.BlockSpec((R, R), lambda i: (0, 0)),
                pl.BlockSpec((R, 1), lambda i: (0, 0)),
            ],
            out_specs=pl.BlockSpec((R, HW), lambda i: (i, 0)),
            scratch_shapes=[
                pltpu.VMEM((R, HW + 2 * PAD), jnp.float32),   # line buffer
                pltpu.VMEM((9 * R, HW), jnp.float32),         # im2col slab
            ],
        ),
        compiler_params=pltpu.CompilerParams(
            dimension_semantics=("parallel",)),
    )(x_flat, w1bd, b1w, w2bd, b2w, w3bd, b3w)

    return out_flat.reshape(N, C, H, W)


def _reference(x, w1, b1, w2, b2, w3, b3):
    """Pure-JAX reference using lax.conv (NCHW activations, OIHW weights)."""
    C = x.shape[1]
    dn = lax.conv_dimension_numbers(x.shape, w1.shape, ('NCHW', 'OIHW', 'NCHW'))
    y1 = lax.conv_general_dilated(x, w1, (1, 1), ((1, 1), (1, 1)),
                                  dimension_numbers=dn) + b1.reshape(1, C, 1, 1)
    y1 = jnp.maximum(y1, 0.0)
    y1 = lax.conv_general_dilated(y1, w2, (1, 1), ((1, 1), (1, 1)),
                                  dimension_numbers=dn) + b2.reshape(1, C, 1, 1)
    y2 = lax.conv_general_dilated(x, w3.reshape(C, C, 1, 1), (1, 1),
                                  ((0, 0), (0, 0)),
                                  dimension_numbers=dn) + b3.reshape(1, C, 1, 1)
    return jnp.maximum(y1 + y2, 0.0)


if __name__ == "__main__":
    N, C, H, W = 2, 4, 16, 16

    key = jax.random.PRNGKey(0)
    kx, k1, k1b, k2, k2b, k3, k3b = jax.random.split(key, 7)

    x = jax.random.normal(kx, (N, C, H, W), dtype=jnp.float32)

    # Deterministic parameter init (PyTorch Conv2d-like uniform bounds).
    bound3 = 1.0 / jnp.sqrt(jnp.float32(C * 3 * 3))
    bound1 = 1.0 / jnp.sqrt(jnp.float32(C * 1 * 1))
    # PyTorch-native OIHW layout: (C_out, C_in, kH, kW); 1x1 conv as (C_out, C_in).
    w1 = jax.random.uniform(k1, (C, C, 3, 3), jnp.float32, -bound3, bound3)
    b1 = jax.random.uniform(k1b, (C,), jnp.float32, -bound3, bound3)
    w2 = jax.random.uniform(k2, (C, C, 3, 3), jnp.float32, -bound3, bound3)
    b2 = jax.random.uniform(k2b, (C,), jnp.float32, -bound3, bound3)
    w3 = jax.random.uniform(k3, (C, C), jnp.float32, -bound1, bound1)
    b3 = jax.random.uniform(k3b, (C,), jnp.float32, -bound1, bound1)

    out = residual_block3(x, w1, b1, w2, b2, w3, b3)
    out = jax.block_until_ready(out)

    ref = jax.block_until_ready(_reference(x, w1, b1, w2, b2, w3, b3))
    assert out.shape == (N, C, H, W), out.shape
    assert jnp.allclose(out, ref, atol=1e-4, rtol=1e-4), \
        float(jnp.max(jnp.abs(out - ref)))

    print("KERNEL_OK")
</pallas_src>

<mosaic_0001>
module attributes {stable_mosaic.version = 11 : i64} {
  func.func @_resblock_kernel(%arg0: i32, %arg1: memref<8x256xf32, #tpu.memory_space<vmem>>, %arg2: memref<8x72xf32, #tpu.memory_space<vmem>>, %arg3: memref<8x1xf32, #tpu.memory_space<vmem>>, %arg4: memref<8x72xf32, #tpu.memory_space<vmem>>, %arg5: memref<8x1xf32, #tpu.memory_space<vmem>>, %arg6: memref<8x8xf32, #tpu.memory_space<vmem>>, %arg7: memref<8x1xf32, #tpu.memory_space<vmem>>, %arg8: memref<8x256xf32, #tpu.memory_space<vmem>>, %arg9: memref<8x512xf32, #tpu.memory_space<vmem>>, %arg10: memref<72x256xf32, #tpu.memory_space<vmem>>) attributes {dimension_semantics = [#tpu.dimension_semantics<parallel>], iteration_bounds = array<i64: 1>, scalar_prefetch = 0 : i64, scratch_operands = 2 : i64, tpu.core_type = #tpu.core_type<tc>, window_params = [{transform_indices = @transform_0, window_bounds = array<i64: 8, 256>}, {pipeline_mode = #tpu.pipeline_mode<synchronous>, transform_indices = @transform_1, window_bounds = array<i64: 8, 72>}, {pipeline_mode = #tpu.pipeline_mode<synchronous>, transform_indices = @transform_2, window_bounds = array<i64: 8, 1>}, {pipeline_mode = #tpu.pipeline_mode<synchronous>, transform_indices = @transform_3, window_bounds = array<i64: 8, 72>}, {pipeline_mode = #tpu.pipeline_mode<synchronous>, transform_indices = @transform_4, window_bounds = array<i64: 8, 1>}, {pipeline_mode = #tpu.pipeline_mode<synchronous>, transform_indices = @transform_5, window_bounds = array<i64: 8, 8>}, {pipeline_mode = #tpu.pipeline_mode<synchronous>, transform_indices = @transform_6, window_bounds = array<i64: 8, 1>}, {transform_indices = @transform_7, window_bounds = array<i64: 8, 256>}]} {
    %0 = tpu.iota {dimensions = array<i32: 1>} : vector<1x256xi32>
    %c16_i32 = arith.constant 16 : i32
    %c0_i32 = arith.constant 0 : i32
    %1 = arith.cmpi eq, %c16_i32, %c0_i32 : i32
    %c1_i32 = arith.constant 1 : i32
    %2 = arith.select %1, %c1_i32, %c16_i32 : i32
    %3 = vector.broadcast %2 : i32 to vector<1x256xi32>
    %4 = arith.remsi %0, %3 : vector<1x256xi32>
    %c0_i32_0 = arith.constant 0 : i32
    %5 = vector.broadcast %c0_i32_0 : i32 to vector<1x256xi32>
    %6 = arith.cmpi ne, %4, %5 : vector<1x256xi32>
    %c0_i32_1 = arith.constant 0 : i32
    %7 = vector.broadcast %c0_i32_1 : i32 to vector<1x256xi32>
    %8 = arith.cmpi slt, %4, %7 : vector<1x256xi32>
    %c0_i32_2 = arith.constant 0 : i32
    %9 = arith.cmpi slt, %2, %c0_i32_2 : i32
    %10 = vector.broadcast %9 : i1 to vector<1x256xi1>
    %11 = vector.broadcast %10 : vector<1x256xi1> to vector<1x256xi1>
    %12 = arith.xori %8, %11 : vector<1x256xi1>
    %13 = arith.andi %12, %6 : vector<1x256xi1>
    %14 = vector.broadcast %2 : i32 to vector<1x256xi32>
    %15 = arith.addi %4, %14 : vector<1x256xi32>
    %16 = arith.select %13, %15, %4 : vector<1x256xi1>, vector<1x256xi32>
    %c1_i32_3 = arith.constant 1 : i32
    %17 = vector.broadcast %c1_i32_3 : i32 to vector<1x256xi32>
    %18 = arith.cmpi sge, %16, %17 : vector<1x256xi32>
    %c14_i32 = arith.constant 14 : i32
    %19 = vector.broadcast %c14_i32 : i32 to vector<1x256xi32>
    %20 = arith.cmpi sle, %16, %19 : vector<1x256xi32>
    %cst = arith.constant 0.000000e+00 : f32
    %21 = vector.broadcast %cst : f32 to vector<8x128xf32>
    %c0 = arith.constant 0 : index
    %c0_4 = arith.constant 0 : index
    %22 = vector.load %arg9[%c0, %c0_4] : memref<8x512xf32, #tpu.memory_space<vmem>>, vector<8x128xf32>
    tpu.vector_store %arg9[%c0, %c0_4], %21 {strides = array<i32>} : memref<8x512xf32, #tpu.memory_space<vmem>>, vector<8x128xf32>,
    %cst_5 = arith.constant 0.000000e+00 : f32
    %23 = vector.broadcast %cst_5 : f32 to vector<8x128xf32>
    %c0_6 = arith.constant 0 : index
    %c384 = arith.constant 384 : index
    %24 = vector.load %arg9[%c0_6, %c384] : memref<8x512xf32, #tpu.memory_space<vmem>>, vector<8x128xf32>
    tpu.vector_store %arg9[%c0_6, %c384], %23 {strides = array<i32>} : memref<8x512xf32, #tpu.memory_space<vmem>>, vector<8x128xf32>,
    %c0_7 = arith.constant 0 : index
    %c0_8 = arith.constant 0 : index
    %25 = vector.load %arg1[%c0_7, %c0_8] : memref<8x256xf32, #tpu.memory_space<vmem>>, vector<8x256xf32>
    %c0_9 = arith.constant 0 : index
    %c128 = arith.constant 128 : index
    %26 = vector.load %arg9[%c0_9, %c128] : memref<8x512xf32, #tpu.memory_space<vmem>>, vector<8x256xf32>
    tpu.vector_store %arg9[%c0_9, %c128], %25 {strides = array<i32>} : memref<8x512xf32, #tpu.memory_space<vmem>>, vector<8x256xf32>,
    %c0_10 = arith.constant 0 : index
    %c111 = arith.constant 111 : index
    %27 = vector.load %arg9[%c0_10, %c111] : memref<8x512xf32, #tpu.memory_space<vmem>>, vector<8x256xf32>
    %cst_11 = arith.constant 0.000000e+00 : f32
    %28 = vector.shape_cast %18 : vector<1x256xi1> to vector<1x256xi1>
    %29 = vector.broadcast %28 : vector<1x256xi1> to vector<8x256xi1>
    %30 = vector.broadcast %cst_11 : f32 to vector<8x256xf32>
    %31 = arith.select %29, %27, %30 : vector<8x256xi1>, vector<8x256xf32>
    %c0_12 = arith.constant 0 : index
    %c0_13 = arith.constant 0 : index
    %32 = vector.load %arg10[%c0_12, %c0_13] : memref<72x256xf32, #tpu.memory_space<vmem>>, vector<8x256xf32>
    tpu.vector_store %arg10[%c0_12, %c0_13], %31 {strides = array<i32>} : memref<72x256xf32, #tpu.memory_space<vmem>>, vector<8x256xf32>,
    %c0_14 = arith.constant 0 : index
    %c112 = arith.constant 112 : index
    %33 = vector.load %arg9[%c0_14, %c112] : memref<8x512xf32, #tpu.memory_space<vmem>>, vector<8x256xf32>
    %c8 = arith.constant 8 : index
    %c0_15 = arith.constant 0 : index
    %34 = vector.load %arg10[%c8, %c0_15] : memref<72x256xf32, #tpu.memory_space<vmem>>, vector<8x256xf32>
    tpu.vector_store %arg10[%c8, %c0_15], %33 {strides = array<i32>} : memref<72x256xf32, #tpu.memory_space<vmem>>, vector<8x256xf32>,
    %c0_16 = arith.constant 0 : index
    %c113 = arith.constant 113 : index
    %35 = vector.load %arg9[%c0_16, %c113] : memref<8x512xf32, #tpu.memory_space<vmem>>, vector<8x256xf32>
    %cst_17 = arith.constant 0.000000e+00 : f32
    %36 = vector.shape_cast %20 : vector<1x256xi1> to vector<1x256xi1>
    %37 = vector.broadcast %36 : vector<1x256xi1> to vector<8x256xi1>
    %38 = vector.broadcast %cst_17 : f32 to vector<8x256xf32>
    %39 = arith.select %37, %35, %38 : vector<8x256xi1>, vector<8x256xf32>
    %c16 = arith.constant 16 : index
    %c0_18 = arith.constant 0 : index
    %40 = vector.load %arg10[%c16, %c0_18] : memref<72x256xf32, #tpu.memory_space<vmem>>, vector<8x256xf32>
    tpu.vector_store %arg10[%c16, %c0_18], %39 {strides = array<i32>} : memref<72x256xf32, #tpu.memory_space<vmem>>, vector<8x256xf32>,
    %c0_19 = arith.constant 0 : index
    %c127 = arith.constant 127 : index
    %41 = vector.load %arg9[%c0_19, %c127] : memref<8x512xf32, #tpu.memory_space<vmem>>, vector<8x256xf32>
    %cst_20 = arith.constant 0.000000e+00 : f32
    %42 = vector.shape_cast %18 : vector<1x256xi1> to vector<1x256xi1>
    %43 = vector.broadcast %42 : vector<1x256xi1> to vector<8x256xi1>
    %44 = vector.broadcast %cst_20 : f32 to vector<8x256xf32>
    %45 = arith.select %43, %41, %44 : vector<8x256xi1>, vector<8x256xf32>
    %c24 = arith.constant 24 : index
    %c0_21 = arith.constant 0 : index
    %46 = vector.load %arg10[%c24, %c0_21] : memref<72x256xf32, #tpu.memory_space<vmem>>, vector<8x256xf32>
    tpu.vector_store %arg10[%c24, %c0_21], %45 {strides = array<i32>} : memref<72x256xf32, #tpu.memory_space<vmem>>, vector<8x256xf32>,
    %c0_22 = arith.constant 0 : index
    %c128_23 = arith.constant 128 : index
    %47 = vector.load %arg9[%c0_22, %c128_23] : memref<8x512xf32, #tpu.memory_space<vmem>>, vector<8x256xf32>
    %c32 = arith.constant 32 : index
    %c0_24 = arith.constant 0 : index
    %48 = vector.load %arg10[%c32, %c0_24] : memref<72x256xf32, #tpu.memory_space<vmem>>, vector<8x256xf32>
    tpu.vector_store %arg10[%c32, %c0_24], %47 {strides = array<i32>} : memref<72x256xf32, #tpu.memory_space<vmem>>, vector<8x256xf32>,
    %c0_25 = arith.constant 0 : index
    %c129 = arith.constant 129 : index
    %49 = vector.load %arg9[%c0_25, %c129] : memref<8x512xf32, #tpu.memory_space<vmem>>, vector<8x256xf32>
    %cst_26 = arith.constant 0.000000e+00 : f32
    %50 = vector.shape_cast %20 : vector<1x256xi1> to vector<1x256xi1>
    %51 = vector.broadcast %50 : vector<1x256xi1> to vector<8x256xi1>
    %52 = vector.broadcast %cst_26 : f32 to vector<8x256xf32>
    %53 = arith.select %51, %49, %52 : vector<8x256xi1>, vector<8x256xf32>
    %c40 = arith.constant 40 : index
    %c0_27 = arith.constant 0 : index
    %54 = vector.load %arg10[%c40, %c0_27] : memref<72x256xf32, #tpu.memory_space<vmem>>, vector<8x256xf32>
    tpu.vector_store %arg10[%c40, %c0_27], %53 {strides = array<i32>} : memref<72x256xf32, #tpu.memory_space<vmem>>, vector<8x256xf32>,
    %c0_28 = arith.constant 0 : index
    %c143 = arith.constant 143 : index
    %55 = vector.load %arg9[%c0_28, %c143] : memref<8x512xf32, #tpu.memory_space<vmem>>, vector<8x256xf32>
    %cst_29 = arith.constant 0.000000e+00 : f32
    %56 = vector.shape_cast %18 : vector<1x256xi1> to vector<1x256xi1>
    %57 = vector.broadcast %56 : vector<1x256xi1> to vector<8x256xi1>
    %58 = vector.broadcast %cst_29 : f32 to vector<8x256xf32>
    %59 = arith.select %57, %55, %58 : vector<8x256xi1>, vector<8x256xf32>
    %c48 = arith.constant 48 : index
    %c0_30 = arith.constant 0 : index
    %60 = vector.load %arg10[%c48, %c0_30] : memref<72x256xf32, #tpu.memory_space<vmem>>, vector<8x256xf32>
    tpu.vector_store %arg10[%c48, %c0_30], %59 {strides = array<i32>} : memref<72x256xf32, #tpu.memory_space<vmem>>, vector<8x256xf32>,
    %c0_31 = arith.constant 0 : index
    %c144 = arith.constant 144 : index
    %61 = vector.load %arg9[%c0_31, %c144] : memref<8x512xf32, #tpu.memory_space<vmem>>, vector<8x256xf32>
    %c56 = arith.constant 56 : index
    %c0_32 = arith.constant 0 : index
    %62 = vector.load %arg10[%c56, %c0_32] : memref<72x256xf32, #tpu.memory_space<vmem>>, vector<8x256xf32>
    tpu.vector_store %arg10[%c56, %c0_32], %61 {strides = array<i32>} : memref<72x256xf32, #tpu.memory_space<vmem>>, vector<8x256xf32>,
    %c0_33 = arith.constant 0 : index
    %c145 = arith.constant 145 : index
    %63 = vector.load %arg9[%c0_33, %c145] : memref<8x512xf32, #tpu.memory_space<vmem>>, vector<8x256xf32>
    %cst_34 = arith.constant 0.000000e+00 : f32
    %64 = vector.shape_cast %20 : vector<1x256xi1> to vector<1x256xi1>
    %65 = vector.broadcast %64 : vector<1x256xi1> to vector<8x256xi1>
    %66 = vector.broadcast %cst_34 : f32 to vector<8x256xf32>
    %67 = arith.select %65, %63, %66 : vector<8x256xi1>, vector<8x256xf32>
    %c64 = arith.constant 64 : index
    %c0_35 = arith.constant 0 : index
    %68 = vector.load %arg10[%c64, %c0_35] : memref<72x256xf32, #tpu.memory_space<vmem>>, vector<8x256xf32>
    tpu.vector_store %arg10[%c64, %c0_35], %67 {strides = array<i32>} : memref<72x256xf32, #tpu.memory_space<vmem>>, vector<8x256xf32>,
    %c0_36 = arith.constant 0 : index
    %c0_37 = arith.constant 0 : index
    %69 = vector.load %arg2[%c0_36, %c0_37] : memref<8x72xf32, #tpu.memory_space<vmem>>, vector<8x72xf32>
    %c0_38 = arith.constant 0 : index
    %c0_39 = arith.constant 0 : index
    %70 = vector.load %arg10[%c0_38, %c0_39] : memref<72x256xf32, #tpu.memory_space<vmem>>, vector<72x256xf32>
    %cst_40 = arith.constant dense<0.000000e+00> : vector<8x256xf32>
    %71 = tpu.matmul %69, %70, %cst_40 {dimension_numbers = #tpu.dot_dimension_numbers<[1], [0], [0], [1], [0, 0, 1, 1], [], []>} : vector<8x72xf32>, vector<72x256xf32>, vector<8x256xf32> -> vector<8x256xf32>
    %c0_41 = arith.constant 0 : index
    %c0_42 = arith.constant 0 : index
    %72 = vector.load %arg3[%c0_41, %c0_42] : memref<8x1xf32, #tpu.memory_space<vmem>>, vector<8x1xf32>
    %73 = vector.broadcast %72 : vector<8x1xf32> to vector<8x256xf32>
    %74 = arith.addf %71, %73 : vector<8x256xf32>
    %cst_43 = arith.constant 0.000000e+00 : f32
    %75 = vector.broadcast %cst_43 : f32 to vector<8x256xf32>
    %76 = arith.maximumf %74, %75 : vector<8x256xf32>
    %c0_44 = arith.constant 0 : index
    %c128_45 = arith.constant 128 : index
    %77 = vector.load %arg9[%c0_44, %c128_45] : memref<8x512xf32, #tpu.memory_space<vmem>>, vector<8x256xf32>
    tpu.vector_store %arg9[%c0_44, %c128_45], %76 {strides = array<i32>} : memref<8x512xf32, #tpu.memory_space<vmem>>, vector<8x256xf32>,
    %c0_46 = arith.constant 0 : index
    %c111_47 = arith.constant 111 : index
    %78 = vector.load %arg9[%c0_46, %c111_47] : memref<8x512xf32, #tpu.memory_space<vmem>>, vector<8x256xf32>
    %cst_48 = arith.constant 0.000000e+00 : f32
    %79 = vector.shape_cast %18 : vector<1x256xi1> to vector<1x256xi1>
    %80 = vector.broadcast %79 : vector<1x256xi1> to vector<8x256xi1>
    %81 = vector.broadcast %cst_48 : f32 to vector<8x256xf32>
    %82 = arith.select %80, %78, %81 : vector<8x256xi1>, vector<8x256xf32>
    %c0_49 = arith.constant 0 : index
    %c0_50 = arith.constant 0 : index
    %83 = vector.load %arg10[%c0_49, %c0_50] : memref<72x256xf32, #tpu.memory_space<vmem>>, vector<8x256xf32>
    tpu.vector_store %arg10[%c0_49, %c0_50], %82 {strides = array<i32>} : memref<72x256xf32, #tpu.memory_space<vmem>>, vector<8x256xf32>,
    %c0_51 = arith.constant 0 : index
    %c112_52 = arith.constant 112 : index
    %84 = vector.load %arg9[%c0_51, %c112_52] : memref<8x512xf32, #tpu.memory_space<vmem>>, vector<8x256xf32>
    %c8_53 = arith.constant 8 : index
    %c0_54 = arith.constant 0 : index
    %85 = vector.load %arg10[%c8_53, %c0_54] : memref<72x256xf32, #tpu.memory_space<vmem>>, vector<8x256xf32>
    tpu.vector_store %arg10[%c8_53, %c0_54], %84 {strides = array<i32>} : memref<72x256xf32, #tpu.memory_space<vmem>>, vector<8x256xf32>,
    %c0_55 = arith.constant 0 : index
    %c113_56 = arith.constant 113 : index
    %86 = vector.load %arg9[%c0_55, %c113_56] : memref<8x512xf32, #tpu.memory_space<vmem>>, vector<8x256xf32>
    %cst_57 = arith.constant 0.000000e+00 : f32
    %87 = vector.shape_cast %20 : vector<1x256xi1> to vector<1x256xi1>
    %88 = vector.broadcast %87 : vector<1x256xi1> to vector<8x256xi1>
    %89 = vector.broadcast %cst_57 : f32 to vector<8x256xf32>
    %90 = arith.select %88, %86, %89 : vector<8x256xi1>, vector<8x256xf32>
    %c16_58 = arith.constant 16 : index
    %c0_59 = arith.constant 0 : index
    %91 = vector.load %arg10[%c16_58, %c0_59] : memref<72x256xf32, #tpu.memory_space<vmem>>, vector<8x256xf32>
    tpu.vector_store %arg10[%c16_58, %c0_59], %90 {strides = array<i32>} : memref<72x256xf32, #tpu.memory_space<vmem>>, vector<8x256xf32>,
    %c0_60 = arith.constant 0 : index
    %c127_61 = arith.constant 127 : index
    %92 = vector.load %arg9[%c0_60, %c127_61] : memref<8x512xf32, #tpu.memory_space<vmem>>, vector<8x256xf32>
    %cst_62 = arith.constant 0.000000e+00 : f32
    %93 = vector.shape_cast %18 : vector<1x256xi1> to vector<1x256xi1>
    %94 = vector.broadcast %93 : vector<1x256xi1> to vector<8x256xi1>
    %95 = vector.broadcast %cst_62 : f32 to vector<8x256xf32>
    %96 = arith.select %94, %92, %95 : vector<8x256xi1>, vector<8x256xf32>
    %c24_63 = arith.constant 24 : index
    %c0_64 = arith.constant 0 : index
    %97 = vector.load %arg10[%c24_63, %c0_64] : memref<72x256xf32, #tpu.memory_space<vmem>>, vector<8x256xf32>
    tpu.vector_store %arg10[%c24_63, %c0_64], %96 {strides = array<i32>} : memref<72x256xf32, #tpu.memory_space<vmem>>, vector<8x256xf32>,
    %c0_65 = arith.constant 0 : index
    %c128_66 = arith.constant 128 : index
    %98 = vector.load %arg9[%c0_65, %c128_66] : memref<8x512xf32, #tpu.memory_space<vmem>>, vector<8x256xf32>
    %c32_67 = arith.constant 32 : index
    %c0_68 = arith.constant 0 : index
    %99 = vector.load %arg10[%c32_67, %c0_68] : memref<72x256xf32, #tpu.memory_space<vmem>>, vector<8x256xf32>
    tpu.vector_store %arg10[%c32_67, %c0_68], %98 {strides = array<i32>} : memref<72x256xf32, #tpu.memory_space<vmem>>, vector<8x256xf32>,
    %c0_69 = arith.constant 0 : index
    %c129_70 = arith.constant 129 : index
    %100 = vector.load %arg9[%c0_69, %c129_70] : memref<8x512xf32, #tpu.memory_space<vmem>>, vector<8x256xf32>
    %cst_71 = arith.constant 0.000000e+00 : f32
    %101 = vector.shape_cast %20 : vector<1x256xi1> to vector<1x256xi1>
    %102 = vector.broadcast %101 : vector<1x256xi1> to vector<8x256xi1>
    %103 = vector.broadcast %cst_71 : f32 to vector<8x256xf32>
    %104 = arith.select %102, %100, %103 : vector<8x256xi1>, vector<8x256xf32>
    %c40_72 = arith.constant 40 : index
    %c0_73 = arith.constant 0 : index
    %105 = vector.load %arg10[%c40_72, %c0_73] : memref<72x256xf32, #tpu.memory_space<vmem>>, vector<8x256xf32>
    tpu.vector_store %arg10[%c40_72, %c0_73], %104 {strides = array<i32>} : memref<72x256xf32, #tpu.memory_space<vmem>>, vector<8x256xf32>,
    %c0_74 = arith.constant 0 : index
    %c143_75 = arith.constant 143 : index
    %106 = vector.load %arg9[%c0_74, %c143_75] : memref<8x512xf32, #tpu.memory_space<vmem>>, vector<8x256xf32>
    %cst_76 = arith.constant 0.000000e+00 : f32
    %107 = vector.shape_cast %18 : vector<1x256xi1> to vector<1x256xi1>
    %108 = vector.broadcast %107 : vector<1x256xi1> to vector<8x256xi1>
    %109 = vector.broadcast %cst_76 : f32 to vector<8x256xf32>
    %110 = arith.select %108, %106, %109 : vector<8x256xi1>, vector<8x256xf32>
    %c48_77 = arith.constant 48 : index
    %c0_78 = arith.constant 0 : index
    %111 = vector.load %arg10[%c48_77, %c0_78] : memref<72x256xf32, #tpu.memory_space<vmem>>, vector<8x256xf32>
    tpu.vector_store %arg10[%c48_77, %c0_78], %110 {strides = array<i32>} : memref<72x256xf32, #tpu.memory_space<vmem>>, vector<8x256xf32>,
    %c0_79 = arith.constant 0 : index
    %c144_80 = arith.constant 144 : index
    %112 = vector.load %arg9[%c0_79, %c144_80] : memref<8x512xf32, #tpu.memory_space<vmem>>, vector<8x256xf32>
    %c56_81 = arith.constant 56 : index
    %c0_82 = arith.constant 0 : index
    %113 = vector.load %arg10[%c56_81, %c0_82] : memref<72x256xf32, #tpu.memory_space<vmem>>, vector<8x256xf32>
    tpu.vector_store %arg10[%c56_81, %c0_82], %112 {strides = array<i32>} : memref<72x256xf32, #tpu.memory_space<vmem>>, vector<8x256xf32>,
    %c0_83 = arith.constant 0 : index
    %c145_84 = arith.constant 145 : index
    %114 = vector.load %arg9[%c0_83, %c145_84] : memref<8x512xf32, #tpu.memory_space<vmem>>, vector<8x256xf32>
    %cst_85 = arith.constant 0.000000e+00 : f32
    %115 = vector.shape_cast %20 : vector<1x256xi1> to vector<1x256xi1>
    %116 = vector.broadcast %115 : vector<1x256xi1> to vector<8x256xi1>
    %117 = vector.broadcast %cst_85 : f32 to vector<8x256xf32>
    %118 = arith.select %116, %114, %117 : vector<8x256xi1>, vector<8x256xf32>
    %c64_86 = arith.constant 64 : index
    %c0_87 = arith.constant 0 : index
    %119 = vector.load %arg10[%c64_86, %c0_87] : memref<72x256xf32, #tpu.memory_space<vmem>>, vector<8x256xf32>
    tpu.vector_store %arg10[%c64_86, %c0_87], %118 {strides = array<i32>} : memref<72x256xf32, #tpu.memory_space<vmem>>, vector<8x256xf32>,
    %c0_88 = arith.constant 0 : index
    %c0_89 = arith.constant 0 : index
    %120 = vector.load %arg4[%c0_88, %c0_89] : memref<8x72xf32, #tpu.memory_space<vmem>>, vector<8x72xf32>
    %c0_90 = arith.constant 0 : index
    %c0_91 = arith.constant 0 : index
    %121 = vector.load %arg10[%c0_90, %c0_91] : memref<72x256xf32, #tpu.memory_space<vmem>>, vector<72x256xf32>
    %cst_92 = arith.constant dense<0.000000e+00> : vector<8x256xf32>
    %122 = tpu.matmul %120, %121, %cst_92 {dimension_numbers = #tpu.dot_dimension_numbers<[1], [0], [0], [1], [0, 0, 1, 1], [], []>} : vector<8x72xf32>, vector<72x256xf32>, vector<8x256xf32> -> vector<8x256xf32>
    %c0_93 = arith.constant 0 : index
    %c0_94 = arith.constant 0 : index
    %123 = vector.load %arg5[%c0_93, %c0_94] : memref<8x1xf32, #tpu.memory_space<vmem>>, vector<8x1xf32>
    %124 = vector.broadcast %123 : vector<8x1xf32> to vector<8x256xf32>
    %125 = arith.addf %122, %124 : vector<8x256xf32>
    %c0_95 = arith.constant 0 : index
    %c0_96 = arith.constant 0 : index
    %126 = vector.load %arg6[%c0_95, %c0_96] : memref<8x8xf32, #tpu.memory_space<vmem>>, vector<8x8xf32>
    %cst_97 = arith.constant dense<0.000000e+00> : vector<8x256xf32>
    %127 = tpu.matmul %126, %25, %cst_97 {dimension_numbers = #tpu.dot_dimension_numbers<[1], [0], [0], [1], [0, 0, 1, 1], [], []>} : vector<8x8xf32>, vector<8x256xf32>, vector<8x256xf32> -> vector<8x256xf32>
    %c0_98 = arith.constant 0 : index
    %c0_99 = arith.constant 0 : index
    %128 = vector.load %arg7[%c0_98, %c0_99] : memref<8x1xf32, #tpu.memory_space<vmem>>, vector<8x1xf32>
    %129 = vector.broadcast %128 : vector<8x1xf32> to vector<8x256xf32>
    %130 = arith.addf %127, %129 : vector<8x256xf32>
    %131 = arith.addf %125, %130 : vector<8x256xf32>
    %cst_100 = arith.constant 0.000000e+00 : f32
    %132 = vector.broadcast %cst_100 : f32 to vector<8x256xf32>
    %133 = arith.maximumf %131, %132 : vector<8x256xf32>
    %c0_101 = arith.constant 0 : index
    %c0_102 = arith.constant 0 : index
    %134 = vector.load %arg8[%c0_101, %c0_102] : memref<8x256xf32, #tpu.memory_space<vmem>>, vector<8x256xf32>
    tpu.vector_store %arg8[%c0_101, %c0_102], %133 {strides = array<i32>} : memref<8x256xf32, #tpu.memory_space<vmem>>, vector<8x256xf32>,
    return
  }
  func.func @transform_0(%arg0: i32) -> (i32, i32) {
    %c0_i32 = arith.constant 0 : i32
    %c0_i32_0 = arith.constant 0 : i32
    return %arg0, %c0_i32 : i32, i32
  }
  func.func @transform_1(%arg0: i32) -> (i32, i32) {
    %c0_i32 = arith.constant 0 : i32
    %c0_i32_0 = arith.constant 0 : i32
    %c0_i32_1 = arith.constant 0 : i32
    return %c0_i32, %c0_i32_0 : i32, i32
  }
  func.func @transform_2(%arg0: i32) -> (i32, i32) {
    %c0_i32 = arith.constant 0 : i32
    %c0_i32_0 = arith.constant 0 : i32
    %c0_i32_1 = arith.constant 0 : i32
    return %c0_i32, %c0_i32_0 : i32, i32
  }
  func.func @transform_3(%arg0: i32) -> (i32, i32) {
    %c0_i32 = arith.constant 0 : i32
    %c0_i32_0 = arith.constant 0 : i32
    %c0_i32_1 = arith.constant 0 : i32
    return %c0_i32, %c0_i32_0 : i32, i32
  }
  func.func @transform_4(%arg0: i32) -> (i32, i32) {
    %c0_i32 = arith.constant 0 : i32
    %c0_i32_0 = arith.constant 0 : i32
    %c0_i32_1 = arith.constant 0 : i32
    return %c0_i32, %c0_i32_0 : i32, i32
  }
  func.func @transform_5(%arg0: i32) -> (i32, i32) {
    %c0_i32 = arith.constant 0 : i32
    %c0_i32_0 = arith.constant 0 : i32
    %c0_i32_1 = arith.constant 0 : i32
    return %c0_i32, %c0_i32_0 : i32, i32
  }
  func.func @transform_6(%arg0: i32) -> (i32, i32) {
    %c0_i32 = arith.constant 0 : i32
    %c0_i32_0 = arith.constant 0 : i32
    %c0_i32_1 = arith.constant 0 : i32
    return %c0_i32, %c0_i32_0 : i32, i32
  }
  func.func @transform_7(%arg0: i32) -> (i32, i32) {
    %c0_i32 = arith.constant 0 : i32
    %c0_i32_0 = arith.constant 0 : i32
    return %arg0, %c0_i32 : i32, i32
  }
}

</mosaic_0001>

<bundles_post_ra>
// kernel: tile.18
= control target key start
LH: loop header
LB: loop body
LE: loop exit
PB: predicated region body
PF: predicated region fallthrough
CT: control target
= control target key end

     0   :  { %s22_s0 = inlined_call_operand.vmem [shape: f32[4], index: 0, kind: input, shape index: {}]   ;;  %s23_s1 = inlined_call_operand.vmem [shape: f32[2,4], index: 1, kind: output, shape index: {}]  }
   0x1   :  { %v4_v0 = vld [vmem:[%s22_s0] ss:$0 sm:$0xff] }
   0x2   :  { %5 = vst [vmem:[%s23_s1] sm:$0x3] %v4_v0 }

// kernel: tile.0
= control target key start
LH: loop header
LB: loop body
LE: loop exit
PB: predicated region body
PF: predicated region fallthrough
CT: control target
= control target key end

     0   :  { %s34_s8 = smov 125   ;;  %vm7_vm0 = vcmask 7168   ;;  %s35_s11 = smov 126   ;;  %s61_s0 = inlined_call_operand.vmem [shape: f32[2,4], index: 0, kind: input, shape index: {}]   ;;  %s62_s1 = inlined_call_operand.vmem [shape: f32[8,1], index: 1, kind: output, shape index: {}]  }
   0x1   :  { %v4_v0 = vld [vmem:[%s61_s0] sm:$0x3]  ;;  %s33_s0 = smov 127  }
   0x2   :  { %5 = vst [vmem:[#allocation0] sm:$0x3] %v4_v0 }
   0x9   :  { %v9_v1 = vld [vmem:[#allocation0] sm:$0x3]  }
   0xa   :  { %v21_v2 = vld [vmem:[#allocation0] sm:$0x3]   ;;  %10 = vrot.lane.b32.xlu0 %v9_v1, %s33_s0 }
   0xb   :  { %22 = vrot.lane.b32.xlu1 %v21_v2, %s34_s8  ;;  %v6_v3 = vld [vmem:[#allocation0] sm:$0x3]  }
   0xc   :  { %v15_v4 = vld [vmem:[#allocation0] sm:$0x3]   ;;  %8 = vst.msk [vmem:[%s62_s1] ss:$4 sm:$0x3] %vm7_vm0, %v6_v3  }
   0xe   :  { %16 = vrot.lane.b32.xlu0 %v15_v4, %s35_s11 }
  0x7c   :  { %v11_v5 = vpop.permute.xlu0 %10  }
  0x7d   :  { %v23_v6 = vpop.permute.xlu1 %22   ;;  %27 = vst.msk [vmem:[%s62_s1 + $0x1] ss:$4 sm:$0x3] %vm7_vm0, %v11_v5  }
  0x7e   :  { %29 = vst.msk [vmem:[%s62_s1 + $0x3] ss:$4 sm:$0x3] %vm7_vm0, %v23_v6  }
  0x80   :  { %v17_v7 = vpop.permute.xlu0 %16  }
  0x81   :  { %28 = vst.msk [vmem:[%s62_s1 + $0x2] ss:$4 sm:$0x3] %vm7_vm0, %v17_v7  }

// kernel: residual_block3.1
= control target key start
LH: loop header
LB: loop body
LE: loop exit
PB: predicated region body
PF: predicated region fallthrough
CT: control target
= control target key end

     0   :  { %v858_v0 = vmov 0.0   ;;  %s859_s24 = smov 17   ;;  %s860_s29 = smov 16   ;;  %v866_v5 = vmov 0   ;;  %v26_v7 = vlaneseq  ;;  %vm79_vm1 = vcmask 138240   ;;  %s1156_s0 = inlined_call_operand.vmem [shape: f32[8,256], index: 0, kind: input, shape index: {}]   ;;  %s1157_s2 = inlined_call_operand.vmem [shape: f32[8,1], index: 2, kind: input, shape index: {}]   ;;  %s1158_s1 = inlined_call_operand.vmem [shape: f32[8,72], index: 1, kind: input, shape index: {}]   ;;  %s1159_s4 = inlined_call_operand.vmem [shape: f32[8,1], index: 4, kind: input, shape index: {}]   ;;  %s1160_s6 = inlined_call_operand.vmem [shape: f32[8,1], index: 6, kind: input, shape index: {}]   ;;  %s1161_s3 = inlined_call_operand.vmem [shape: f32[8,72], index: 3, kind: input, shape index: {}]   ;;  %s1162_s5 = inlined_call_operand.vmem [shape: f32[8,8], index: 5, kind: input, shape index: {}]   ;;  %s1163_s7 = inlined_call_operand.vmem [shape: f32[8,256], index: 7, kind: output, shape index: {}]  }
   0x1   :  { %73 = vrot.lane.b32.xlu1 %v858_v0, %s859_s24  ;;  %v914_v1 = vld [vmem:[%s1156_s0] sm:$0xff]  ;;  %v919_v2 = vld [vmem:[%s1156_s0 + $0x8] sm:$0xff]  ;;  %332 = vmatprep.mubr.f32.mxu0 %v858_v0  ;;  %s861_s30 = smov 1   ;;  %s862_s0 = smov 15   ;;  %vm100_vm2 = vcmask 130048   ;;  %vm144_vm4 = vcmask 7168  }
   0x2   :  { %v786_v3 = vpack.i.bf16 %v919_v2, %v914_v1  ;;  %595 = vmatprep.mubr.f32.mxu1 %v858_v0  ;;  %v806_v4 = vpack.i.bf16 %v858_v0, %v919_v2  ;;  %s863_s8 = smov 127   ;;  %s864_s9 = smov 112   ;;  %821 = vset.pattern.permute.xlu1 %v866_v5  ;;  %v258_v6 = vld [vmem:[%s1157_s2] sm:$0xff]  ;;  %v27_v8 = vand.u32 127, %v26_v7  ;;  %vm868_vm5 = vmmov 1  }
   0x3   :  { %s865_s10 = smov 113   ;;  %857 = vset.pattern.permute.xlu0 %v866_v5  ;;  %s867_s11 = smov 111   ;;  %vm123_vm8 = vcmask 121856   ;;  %vm1165_vm13 = vcmask 1039360   ;;  %vm211_vm14 = vcmask 916480   ;;  %v503_v59 = vld [vmem:[%s1161_s3] sm:$0xff] }
   0x4   :  { %787 = vrot.lane.b32.xlu0 %v786_v3, %s859_s24  ;;  %v28_v9 = vadd.s32 128, %v27_v8  ;;  %v33_v14 = vand.u32 15, %v27_v8  ;;  %v602_v27 = vld [vmem:[%s1162_s5] sm:$0xff] }
   0x5   :  { %94 = vrot.lane.b32.xlu1 %v858_v0, %s860_s29 }
   0x6   :  { %v40_v12 = vand.u32 15, %v28_v9  ;;  %vm967_vm3 = vcmp.ge.s32.totalorder %v33_v14, 1  ;;  %vm996_vm10 = vcmp.le.s32.totalorder %v33_v14, 14 }
   0x7   :  { %vm985_vm7 = vmpackc.low %vm868_vm5, %vm967_vm3 }
   0x8   :  { %792 = vrot.lane.b32.xlu0 %v786_v3, %s860_s29  ;;  %vm963_vm0 = vcmp.ge.s32.totalorder %v40_v12, 1  ;;  %vm989_vm9 = vcmp.le.s32.totalorder %v40_v12, 14  ;;  %vm1164_vm12 = vmpackc.low %vm967_vm3, %vm996_vm10 }
   0x9   :  { %802 = vrot.lane.b32.xlu1 %v786_v3, %s861_s30  ;;  %vm976_vm6 = vmpackc.low %vm868_vm5, %vm963_vm0 }
   0xa   :  { %vm728_vm11 = vmpackc.low %vm963_vm0, %vm989_vm9  ;;  %vm1186_vm0 = vcmask 924672  }
   0xb   :  { %vm1028_vm15 = vmpackc.low %vm989_vm9, %vm868_vm5 }
   0xc   :  { %797 = vrot.lane.b32.xlu0 %v786_v3, %s862_s0 }
   0xd   :  { %138 = vrot.lane.b32.xlu1 %v858_v0, %s861_s30 }
  0x10   :  { %117 = vrot.lane.b32.xlu0 %v858_v0, %s862_s0 }
  0x11   :  { %163 = vrot.lane.b32.xlu1 %v914_v1, %s863_s8 }
  0x14   :  { %807 = vrot.lane.b32.xlu0 %v806_v4, %s863_s8 }
  0x15   :  { %817 = vrot.lane.b32.xlu1 %v806_v4, %s864_s9 }
  0x18   :  { %812 = vrot.lane.b32.xlu0 %v806_v4, %s865_s10 }
  0x19   :  { %205 = vrot.lane.b32.xlu1 %v914_v1, %s864_s9 }
  0x1c   :  { %184 = vrot.lane.b32.xlu0 %v914_v1, %s865_s10 }
  0x1d   :  { %228 = vrot.lane.b32.xlu1 %v858_v0, %s867_s11 }
  0x20   :  { %226 = vrot.lane.b32.xlu0 %v919_v2, %s867_s11 }
  0x21   :  { %261 = vperm.xlu1 %821, %v258_v6  }
  0x24   :  { %224 = vrot.lane.b32.xlu0 %v914_v1, %s867_s11 }
  0x25   :  { %369 = vrot.lane.b32.xlu1 %v858_v0, %s860_s29 }
  0x28   :  { %349 = vrot.lane.b32.xlu0 %v858_v0, %s859_s24 }
  0x29   :  { %407 = vrot.lane.b32.xlu1 %v858_v0, %s861_s30 }
  0x2c   :  { %387 = vrot.lane.b32.xlu0 %v858_v0, %s862_s0 }
  0x73   :  { %v74_v10 = vpop.permute.xlu1 %73 }
  0x76   :  { %v788_v11 = vpop.permute.xlu0 %787 }
  0x77   :  { %v95_v13 = vpop.permute.xlu1 %94  ;;  %v790_v15 = vunpack.i.h.bf16 %v788_v11  ;;  %v789_v16 = vunpack.i.l.bf16 %v788_v11 }
  0x79   :  { %v81_v25 = vsel %vm79_vm1, %v789_v16, %v790_v15  ;;  %v80_v28 = vsel %vm79_vm1, %v74_v10, %v789_v16 }
  0x7a   :  { %v793_v17 = vpop.permute.xlu0 %792 }
  0x7b   :  { %v795_v19 = vunpack.i.h.bf16 %v793_v17  ;;  %v794_v20 = vunpack.i.l.bf16 %v793_v17  ;;  %v803_v21 = vpop.permute.xlu1 %802 }
  0x7c   :  { %v805_v23 = vunpack.i.h.bf16 %v803_v21  ;;  %v804_v24 = vunpack.i.l.bf16 %v803_v21 }
  0x7d   :  { %v102_v26 = vsel %vm100_vm2, %v794_v20, %v795_v19  ;;  %v101_v29 = vsel %vm100_vm2, %v95_v13, %v794_v20  ;;  %v239_v13 = vld [vmem:[%s1158_s1] sm:$0xff] }
  0x7e   :  { %v798_v30 = vpop.permute.xlu0 %797  ;;  %v721_v31 = vpack.c.bf16 %v102_v26, %v81_v25  ;;  %v724_v32 = vpack.c.bf16 %v101_v29, %v80_v28  ;;  %v146_v38 = vsel %vm144_vm4, %v804_v24, %v805_v23  ;;  %v522_v26 = vld [vmem:[%s1159_s4] sm:$0xff] }
  0x7f   :  { %v800_v35 = vunpack.i.h.bf16 %v798_v30  ;;  %v799_v36 = vunpack.i.l.bf16 %v798_v30  ;;  %v139_v37 = vpop.permute.xlu1 %138  ;;  %v603_v28 = vld [vmem:[%s1160_s6] sm:$0xff] }
  0x80   :  { %723 = vmatprep.subr.msk.bf16.mxu0 %vm976_vm6, %v721_v31  ;;  %v145_v40 = vsel %vm144_vm4, %v139_v37, %v804_v24 }
  0x81   :  { %726 = vmatpush1.bf16.msk.msra.mxu0 %vm985_vm7, %v724_v32  ;;  %v125_v41 = vsel %vm123_vm8, %v799_v36, %v800_v35 }
  0x82   :  { %v118_v42 = vpop.permute.xlu0 %117  ;;  %v727_v43 = vpack.c.bf16 %v146_v38, %v125_v41 }
  0x83   :  { %v124_v44 = vsel %vm123_vm8, %v118_v42, %v799_v36  ;;  %v164_v45 = vpop.permute.xlu1 %163 }
  0x84   :  { %v730_v46 = vpack.c.bf16 %v145_v40, %v124_v44  ;;  %729 = vmatprep.subr.msk.bf16.mxu0 %vm728_vm11, %v727_v43 }
  0x86   :  { %v808_v47 = vpop.permute.xlu0 %807  ;;  %732 = vmatpush1.bf16.msk.msra.mxu0 %vm1164_vm12, %v730_v46  ;;  %vm1037_vm12 = vmpackc.low %vm996_vm10, %vm868_vm5  ;;  %vm230_vm5 = vcmask 908288  }
  0x87   :  { %v810_v48 = vunpack.i.h.bf16 %v808_v47  ;;  %v809_v49 = vunpack.i.l.bf16 %v808_v47  ;;  %v818_v50 = vpop.permute.xlu1 %817 }
  0x88   :  { %v820_v51 = vunpack.i.h.bf16 %v818_v50  ;;  %v819_v52 = vunpack.i.l.bf16 %v818_v50 }
  0x89   :  { %v170_v53 = vsel %vm1165_vm13, %v164_v45, %v809_v49  ;;  %v171_v54 = vsel %vm1165_vm13, %v809_v49, %v810_v48  ;;  %vm1166_vm13 = vcmask 924672  }
  0x8a   :  { %v733_v56 = vpack.c.bf16 %v171_v54, %v919_v2  ;;  %v736_v57 = vpack.c.bf16 %v170_v53, %v914_v1  ;;  %v813_v58 = vpop.permute.xlu0 %812  ;;  %v213_v63 = vsel %vm211_vm14, %v819_v52, %v820_v51 }
  0x8b   :  { %v815_v60 = vunpack.i.h.bf16 %v813_v58  ;;  %v814_v61 = vunpack.i.l.bf16 %v813_v58  ;;  %v206_v62 = vpop.permute.xlu1 %205 }
  0x8c   :  { %735 = vmatprep.subr.msk.bf16.mxu0 %vm1028_vm15, %v733_v56  ;;  %v212_v3 = vsel %vm211_vm14, %v206_v62, %v819_v52 }
  0x8d   :  { %738 = vmatpush1.bf16.msk.msra.mxu0 %vm1037_vm12, %v736_v57  ;;  %v192_v4 = vsel %vm1166_vm13, %v814_v61, %v815_v60 }
  0x8e   :  { %v185_v5 = vpop.permute.xlu0 %184  ;;  %v739_v6 = vpack.c.bf16 %v213_v63, %v192_v4 }
  0x8f   :  { %v191_v7 = vsel %vm1166_vm13, %v185_v5, %v814_v61  ;;  %v229_v9 = vpop.permute.xlu1 %228  ;;  %vm264_vm13 = vcmask 588800  }
  0x90   :  { %v742_v8 = vpack.c.bf16 %v212_v3, %v191_v7  ;;  %741 = vmatprep.subr.msk.bf16.mxu0 %vm976_vm6, %v739_v6 }
  0x92   :  { %v227_v10 = vpop.permute.xlu0 %226  ;;  %744 = vmatpush1.bf16.msk.msra.mxu0 %vm985_vm7, %v742_v8 }
  0x93   :  { %v232_v11 = vsel %vm230_vm5, %v227_v10, %v229_v9 }
  0x94   :  { %707 = vmatprep.subr.msk.mxu0 %vm989_vm9, %v232_v11 }
  0x96   :  { %v225_v12 = vpop.permute.xlu0 %224 }
  0x97   :  { %v231_v14 = vsel %vm230_vm5, %v225_v12, %v227_v10 }
  0x98   :  { %708 = vmatpush1.msk.msra.mxu0 %vm996_vm10, %v231_v14 }
  0x99   :  { %694 = vmatmul.mubr.msk.f32.vlgmr.msra.gmra.mrb[0].mxu0 %vm264_vm13, %v239_v13 }
  0x9a   :  { %v350_v30 = vpop.permute.xlu0 %349 }
  0x9e   :  { %v388_v32 = vpop.permute.xlu0 %387 }
  0xa0   :  { %v262_v15 = vpop.permute.xlu1 %261 }
  0xa4   :  { %v370_v29 = vpop.permute.xlu1 %369 }
  0xa8   :  { %v408_v31 = vpop.permute.xlu1 %407 }
 0x16c   :  { %v334_v16 = vpop.f32.mrb[0].mxu0 }
 0x16d   :  { %v335_v17 = vadd.f32 %v334_v16, %v262_v15  ;;  %v336_v19 = vpop.f32.mrb[1].mxu0 }
 0x16e   :  { %v337_v20 = vadd.f32 %v336_v19, %v262_v15 }
 0x16f   :  { %v1063_v21 = vmax.f32 %v335_v17, 0.0 }
 0x170   :  { %v1065_v23 = vmax.f32 %v337_v20, 0.0 }
 0x172   :  { %v827_v24 = vpack.i.bf16 %v1065_v23, %v1063_v21  ;;  %v852_v25 = vpack.i.bf16 %v858_v0, %v1065_v23 }
 0x174   :  { %828 = vrot.lane.b32.xlu1 %v827_v24, %s860_s29  ;;  %823 = vrot.lane.b32.xlu0 %v827_v24, %s859_s24 }
 0x178   :  { %838 = vrot.lane.b32.xlu1 %v827_v24, %s861_s30  ;;  %833 = vrot.lane.b32.xlu0 %v827_v24, %s862_s0 }
 0x17c   :  { %431 = vrot.lane.b32.xlu1 %v1063_v21, %s863_s8  ;;  %451 = vrot.lane.b32.xlu0 %v1063_v21, %s865_s10 }
 0x180   :  { %853 = vrot.lane.b32.xlu1 %v852_v25, %s864_s9  ;;  %843 = vrot.lane.b32.xlu0 %v852_v25, %s863_s8 }
 0x184   :  { %471 = vrot.lane.b32.xlu1 %v1063_v21, %s864_s9  ;;  %848 = vrot.lane.b32.xlu0 %v852_v25, %s865_s10 }
 0x188   :  { %493 = vrot.lane.b32.xlu1 %v858_v0, %s867_s11  ;;  %491 = vrot.lane.b32.xlu0 %v1065_v23, %s867_s11 }
 0x18c   :  { %525 = vperm.xlu1 %821, %v522_v26   ;;  %489 = vrot.lane.b32.xlu0 %v1063_v21, %s867_s11 }
 0x190   :  { %606 = vperm.xlu0 %857, %v603_v28  }
 0x1e6   :  { %v829_v35 = vpop.permute.xlu1 %828  ;;  %v824_v36 = vpop.permute.xlu0 %823 }
 0x1e7   :  { %v831_v37 = vunpack.i.h.bf16 %v829_v35  ;;  %v830_v38 = vunpack.i.l.bf16 %v829_v35  ;;  %v826_v40 = vunpack.i.h.bf16 %v824_v36  ;;  %v825_v41 = vunpack.i.l.bf16 %v824_v36 }
 0x1e9   :  { %v356_v42 = vsel %vm79_vm1, %v825_v41, %v826_v40  ;;  %v376_v43 = vsel %vm100_vm2, %v830_v38, %v831_v37  ;;  %v355_v44 = vsel %vm79_vm1, %v350_v30, %v825_v41  ;;  %v375_v45 = vsel %vm100_vm2, %v370_v29, %v830_v38  ;;  %vm1183_vm1 = vmpackc.low %vm967_vm3, %vm996_vm10 }
 0x1ea   :  { %v839_v46 = vpop.permute.xlu1 %838  ;;  %v834_v47 = vpop.permute.xlu0 %833  ;;  %v745_v48 = vpack.c.bf16 %v376_v43, %v356_v42  ;;  %v748_v49 = vpack.c.bf16 %v375_v45, %v355_v44  ;;  %vm1184_vm2 = vcmask 1039360   ;;  %vm1187_vm3 = vmmov %vm1186_vm0 }
 0x1eb   :  { %v841_v50 = vunpack.i.h.bf16 %v839_v46  ;;  %v840_v51 = vunpack.i.l.bf16 %v839_v46  ;;  %v836_v52 = vunpack.i.h.bf16 %v834_v47  ;;  %v835_v53 = vunpack.i.l.bf16 %v834_v47 }
 0x1ec   :  { %747 = vmatprep.subr.msk.bf16.mxu1 %vm976_vm6, %v745_v48 }
 0x1ed   :  { %v413_v54 = vsel %vm144_vm4, %v408_v31, %v840_v51  ;;  %v414_v56 = vsel %vm144_vm4, %v840_v51, %v841_v50  ;;  %v393_v57 = vsel %vm123_vm8, %v388_v32, %v835_v53  ;;  %v394_v58 = vsel %vm123_vm8, %v835_v53, %v836_v52  ;;  %750 = vmatpush1.bf16.msk.msra.mxu1 %vm985_vm7, %v748_v49  ;;  %vm1185_vm4 = vmmov %vm1184_vm2 }
 0x1ee   :  { %v751_v60 = vpack.c.bf16 %v414_v56, %v394_v58  ;;  %v754_v61 = vpack.c.bf16 %v413_v54, %v393_v57  ;;  %v432_v62 = vpop.permute.xlu1 %431  ;;  %v452_v63 = vpop.permute.xlu0 %451 }
 0x1f0   :  { %753 = vmatprep.subr.msk.bf16.mxu1 %vm728_vm11, %v751_v60 }
 0x1f1   :  { %756 = vmatpush1.bf16.msk.msra.mxu1 %vm1183_vm1, %v754_v61 }
 0x1f2   :  { %v854_v3 = vpop.permute.xlu1 %853  ;;  %v844_v4 = vpop.permute.xlu0 %843 }
 0x1f3   :  { %v846_v5 = vunpack.i.h.bf16 %v844_v4  ;;  %v845_v6 = vunpack.i.l.bf16 %v844_v4  ;;  %v856_v7 = vunpack.i.h.bf16 %v854_v3  ;;  %v855_v8 = vunpack.i.l.bf16 %v854_v3 }
 0x1f5   :  { %v437_v9 = vsel %vm1184_vm2, %v432_v62, %v845_v6  ;;  %v438_v18 = vsel %vm1185_vm4, %v845_v6, %v846_v5  ;;  %v478_v15 = vsel %vm211_vm14, %v855_v8, %v856_v7 }
 0x1f6   :  { %v757_v10 = vpack.c.bf16 %v438_v18, %v1065_v23  ;;  %v760_v11 = vpack.c.bf16 %v437_v9, %v1063_v21  ;;  %v472_v12 = vpop.permute.xlu1 %471  ;;  %v849_v22 = vpop.permute.xlu0 %848 }
 0x1f7   :  { %v851_v13 = vunpack.i.h.bf16 %v849_v22  ;;  %v850_v14 = vunpack.i.l.bf16 %v849_v22  ;;  %v477_v16 = vsel %vm211_vm14, %v472_v12, %v855_v8 }
 0x1f8   :  { %759 = vmatprep.subr.msk.bf16.mxu1 %vm1028_vm15, %v757_v10 }
 0x1f9   :  { %v457_v17 = vsel %vm1186_vm0, %v452_v63, %v850_v14  ;;  %v458_v19 = vsel %vm1187_vm3, %v850_v14, %v851_v13  ;;  %762 = vmatpush1.bf16.msk.msra.mxu1 %vm1037_vm12, %v760_v11 }
 0x1fa   :  { %v763_v20 = vpack.c.bf16 %v478_v15, %v458_v19  ;;  %v766_v21 = vpack.c.bf16 %v477_v16, %v457_v17  ;;  %v494_v23 = vpop.permute.xlu1 %493  ;;  %v492_v24 = vpop.permute.xlu0 %491 }
 0x1fb   :  { %v496_v55 = vsel %vm230_vm5, %v492_v24, %v494_v23 }
 0x1fc   :  { %765 = vmatprep.subr.msk.bf16.mxu1 %vm976_vm6, %v763_v20  ;;  %vm609_vm6 = vcmask 64512  }
 0x1fd   :  { %768 = vmatpush1.bf16.msk.msra.mxu1 %vm985_vm7, %v766_v21 }
 0x1fe   :  { %v490_v25 = vpop.permute.xlu0 %489  ;;  %719 = vmatprep.subr.msk.mxu1 %vm989_vm9, %v496_v55 }
 0x1ff   :  { %v495_v26 = vsel %vm230_vm5, %v490_v25, %v492_v24 }
 0x201   :  { %720 = vmatpush1.msk.msra.mxu1 %vm996_vm10, %v495_v26 }
 0x202   :  { %695 = vmatmul.mubr.msk.f32.vlgmr.msra.gmra.mrb[0].mxu1 %vm264_vm13, %v503_v59  ;;  %613 = vmatprep.subr.mxu1 %v919_v2 }
 0x203   :  { %614 = vmatpush1.msra.mxu1 %v914_v1  ;;  %677 = vmatprep.mubr.f32.mxu1 %v858_v0 }
 0x20a   :  { %696 = vmatmul.mubr.msk.f32.vlgmr.msra.gmra.mrb[0].mxu1 %vm609_vm6, %v602_v27 }
 0x20b   :  { %v526_v34 = vpop.permute.xlu1 %525 }
 0x20f   :  { %v607_v33 = vpop.permute.xlu0 %606 }
 0x210   :  { %v769_v28 = vadd.f32 %v607_v33, %v526_v34 }
 0x2dd   :  { %v679_v29 = vpop.f32.mrb[0].mxu1 }
 0x2de   :  { %v770_v39 = vadd.f32 %v769_v28, %v679_v29  ;;  %v681_v30 = vpop.f32.mrb[1].mxu1 }
 0x2df   :  { %v772_v31 = vadd.f32 %v769_v28, %v681_v30 }
 0x2e0   :  { %v686_v32 = vmax.f32 %v770_v39, 0.0 }
 0x2e1   :  { %v687_v35 = vmax.f32 %v772_v31, 0.0 }
 0x2e2   :  { %688 = vst [vmem:[%s1163_s7] sm:$0xff] %v686_v32 }
 0x2e3   :  { %689 = vst [vmem:[%s1163_s7 + $0x8] sm:$0xff] %v687_v35 }

</bundles_post_ra>
